<compile_context>
chip_gen: v7x
topology: tpu7x:2x2x1
jax: 0.10.0
libtpu: 0.0.40
codegen_flags: <defaults>
</compile_context>

<pallas_src>
import functools

import jax
import jax.numpy as jnp
import numpy as np
from jax.experimental import pallas as pl
from jax.experimental.pallas import tpu as pltpu


def _round_up(x, m):
    return (x + m - 1) // m * m


# ----------------------------- Pallas kernels ------------------------------

def _mlp_layers(h, wb_refs, activations):
    """Apply a stack of Linear(+act) layers to an in-register activation."""
    for i, act in enumerate(activations):
        w = wb_refs[2 * i][...]          # (n_i, m_i), pre-transposed
        b = wb_refs[2 * i + 1][...]      # (1, m_i)
        h = jnp.dot(h, w, preferred_element_type=jnp.float32) + b
        if act == "sigmoid":
            h = jax.nn.sigmoid(h)
        else:
            h = jnp.maximum(h, 0.0)
    return h


def _mlp_kernel(x_ref, *refs, activations):
    # refs = (w0, b0, w1, b1, ..., out_ref); whole MLP fused in one kernel.
    out_ref = refs[-1]
    wb = refs[:-1]
    out_ref[...] = _mlp_layers(x_ref[...], wb, activations).astype(out_ref.dtype)


def _emb_bag_kernel(idx_ref, tab_ref, out_ref):
    # idx: (1, tb, L) int32, tab: (1, n_pad, m) -> out: (1, tb, m)  (sum pool)
    # Sum pooling as a one-hot "counts" matrix so the gather becomes one MXU
    # matmul instead of tb*L masked 1-row loads.
    idx = idx_ref[0]                       # (tb, L)
    tab = tab_ref[0]                       # (n_pad, m)
    tb, L = idx.shape
    n_pad = tab.shape[0]
    row_ids = jax.lax.broadcasted_iota(jnp.int32, (tb, n_pad), 1)
    counts = jnp.zeros((tb, n_pad), jnp.float32)
    for l in range(L):                     # L is small & static -> unrolled
        counts = counts + (row_ids == idx[:, l:l + 1]).astype(jnp.float32)
    out_ref[0] = jnp.dot(counts, tab, preferred_element_type=jnp.float32)


def _interact_top_kernel(x_ref, ly_ref, *refs, activations, ntables):
    # x: (tb, d), ly: (ntables, tb, d), refs = (w0, b0, ..., out_ref)
    out_ref = refs[-1]
    wb = refs[:-1]
    x = x_ref[...]
    feats = [x] + [ly_ref[k] for k in range(ntables)]
    # Pairwise dots, vectorized over the batch tile (same li/lj order as torch:
    # for i in range(K): for j in range(i)).
    zcols = []
    for i in range(ntables + 1):
        for j in range(i):
            zcols.append(jnp.sum(feats[i] * feats[j], axis=-1, keepdims=True))
    r = jnp.concatenate([x] + zcols, axis=-1)       # (tb, d + n_pairs)
    out_ref[...] = _mlp_layers(r, wb, activations).astype(out_ref.dtype)


# ---------------------------- pallas_call wrappers --------------------------

def _mlp_flat_args_and_specs(params):
    """Flatten (W, b) pairs and build full-array (non-tiled) BlockSpecs."""
    flat, specs = [], []
    for w, b in params:
        flat += [w, b]
        specs += [pl.BlockSpec(w.shape, lambda i: (0, 0)),
                  pl.BlockSpec(b.shape, lambda i: (0, 0))]
    return flat, specs


def _mlp_cost_tuple(B, params, activations):
    flops = bytes_acc = trans = 0
    for (w, b), act in zip(params, activations):
        n, m = w.shape
        flops += 2 * B * n * m
        bytes_acc += 4 * (n * m + m)
        if act == "sigmoid":
            trans += B * m
    bytes_acc += 4 * B * (params[0][0].shape[0] + params[-1][0].shape[1])
    return int(flops), int(trans), int(bytes_acc)


def fused_mlp(x, params, activations, *, tile_b, cost):
    B_pad, n_in = x.shape
    out_dim = params[-1][0].shape[1]
    flat, w_specs = _mlp_flat_args_and_specs(params)
    return pl.pallas_call(
        functools.partial(_mlp_kernel, activations=activations),
        out_shape=jax.ShapeDtypeStruct((B_pad, out_dim), jnp.float32),
        grid=(B_pad // tile_b,),
        in_specs=[pl.BlockSpec((tile_b, n_in), lambda i: (i, 0))] + w_specs,
        out_specs=pl.BlockSpec((tile_b, out_dim), lambda i: (i, 0)),
        compiler_params=pltpu.CompilerParams(dimension_semantics=("parallel",)),
        cost_estimate=cost,
    )(x, *flat)


def fused_embedding_bags(emb_stack, idx, *, tile_b):
    # TODO(synk): tables are staged whole in VMEM (counts @ table MXU matmul);
    # production-size tables need HBM-resident gathers (memory_space=pl.ANY +
    # manual make_async_copy double-buffering).
    ntables, n_pad, m = emb_stack.shape
    _, B_pad, L = idx.shape
    return pl.pallas_call(
        _emb_bag_kernel,
        out_shape=jax.ShapeDtypeStruct((ntables, B_pad, m), jnp.float32),
        grid=(ntables, B_pad // tile_b),
        in_specs=[pl.BlockSpec((1, tile_b, L), lambda t, b: (t, b, 0)),
                  pl.BlockSpec((1, n_pad, m), lambda t, b: (t, 0, 0))],
        out_specs=pl.BlockSpec((1, tile_b, m), lambda t, b: (t, b, 0)),
        compiler_params=pltpu.CompilerParams(
            dimension_semantics=("parallel", "parallel")),
    )(idx, emb_stack)


def fused_interact_top(x, ly, params, activations, *, tile_b, cost):
    B_pad, d = x.shape
    ntables = ly.shape[0]
    out_dim = params[-1][0].shape[1]
    flat, w_specs = _mlp_flat_args_and_specs(params)
    return pl.pallas_call(
        functools.partial(_interact_top_kernel, activations=activations,
                          ntables=ntables),
        out_shape=jax.ShapeDtypeStruct((B_pad, out_dim), jnp.float32),
        grid=(B_pad // tile_b,),
        in_specs=[pl.BlockSpec((tile_b, d), lambda i: (i, 0)),
                  pl.BlockSpec((ntables, tile_b, d), lambda i: (0, i, 0))]
                 + w_specs,
        out_specs=pl.BlockSpec((tile_b, out_dim), lambda i: (i, 0)),
        compiler_params=pltpu.CompilerParams(dimension_semantics=("parallel",)),
        cost_estimate=cost,
    )(x, ly, *flat)


# ------------------------------ DLRM wrapper -------------------------------

def init_mlp_params(key, ln):
    """Matches create_mlp init: W~N(0, sqrt(2/(m+n))), b~N(0, sqrt(1/m))."""
    params = []
    for i in range(len(ln) - 1):
        n, m = int(ln[i]), int(ln[i + 1])
        key, kw, kb = jax.random.split(key, 3)
        W = jax.random.normal(kw, (m, n), jnp.float32) * np.sqrt(2.0 / (m + n))
        b = jax.random.normal(kb, (m,), jnp.float32) * np.sqrt(1.0 / m)
        params.append((W.T, b.reshape(1, m)))     # pre-transposed (n, m)
    return params, key


def init_emb_params(key, ln_emb, m_spa):
    """Matches create_emb init: W ~ U(-sqrt(1/n), sqrt(1/n)), shape (n, m)."""
    tables = []
    for n in ln_emb:
        key, kt = jax.random.split(key)
        bound = np.sqrt(1.0 / n)
        W = jax.random.uniform(kt, (int(n), int(m_spa)), jnp.float32,
                               minval=-bound, maxval=bound)
        tables.append(W)
    return tables, key


class DLRMPallas:
    """Sequential forward of DLRM_Net with arch_interaction_op='dot',
    arch_interaction_itself=False, weighted_pooling=None, loss_threshold=0."""

    def __init__(self, key, m_spa, ln_emb, ln_bot, ln_top,
                 sigmoid_bot=-1, sigmoid_top=None):
        self.m_spa = int(m_spa)
        self.ln_emb = [int(n) for n in ln_emb]
        self.ntables = len(ln_emb)
        self.sigmoid_bot = sigmoid_bot
        self.sigmoid_top = (len(ln_top) - 2) if sigmoid_top is None else sigmoid_top
        self.bot_params, key = init_mlp_params(key, ln_bot)
        self.top_params, key = init_mlp_params(key, ln_top)
        self.emb_tables, key = init_emb_params(key, ln_emb, m_spa)
        self.bot_acts = tuple("sigmoid" if i == self.sigmoid_bot else "relu"
                              for i in range(len(self.bot_params)))
        self.top_acts = tuple("sigmoid" if i == self.sigmoid_top else "relu"
                              for i in range(len(self.top_params)))
        # Stack + zero-pad tables into (ntables, n_pad, m); the last padded row
        # is always zero and is used as the "null" index for padded lookups.
        self.n_pad = _round_up(max(self.ln_emb) + 1, 128)
        stack = np.zeros((self.ntables, self.n_pad, self.m_spa), np.float32)
        for k, tab in enumerate(self.emb_tables):
            stack[k, :tab.shape[0], :] = np.asarray(tab)
        self.emb_stack = jnp.asarray(stack)
        self.null_idx = self.n_pad - 1

    # ---------------------------- forward (Pallas) --------------------------

    def _pack_indices(self, lS_o, lS_i, B, B_pad):
        # TODO(synk): ragged bags (arbitrary offsets) are not supported; a
        # fixed bag length per table with offsets == arange(B)*L is assumed.
        idx = np.full((self.ntables, B_pad, 0), self.null_idx, np.int32)
        L_k = [int(lS_i[k].shape[0]) // B for k in range(self.ntables)]
        L_max = max(L_k)
        idx = np.full((self.ntables, B_pad, L_max), self.null_idx, np.int32)
        for k in range(self.ntables):
            ik = np.asarray(lS_i[k]).reshape(B, L_k[k]).astype(np.int32)
            idx[k, :B, :L_k[k]] = ik
        return jnp.asarray(idx)

    def forward(self, dense_x, lS_o, lS_i):
        B, n0 = dense_x.shape
        tile_b = min(128, _round_up(B, 8))
        B_pad = _round_up(B, tile_b)
        x_pad = jnp.zeros((B_pad, n0), jnp.float32).at[:B].set(dense_x)
        idx = self._pack_indices(lS_o, lS_i, B, B_pad)

        f, t, by = _mlp_cost_tuple(B_pad, self.bot_params, self.bot_acts)
        x = fused_mlp(x_pad, self.bot_params, self.bot_acts, tile_b=tile_b,
                      cost=pl.CostEstimate(flops=f, transcendentals=t,
                                           bytes_accessed=by))

        ly = fused_embedding_bags(self.emb_stack, idx, tile_b=tile_b)

        K = self.ntables + 1
        n_pairs = K * (K - 1) // 2
        f, t, by = _mlp_cost_tuple(B_pad, self.top_params, self.top_acts)
        f += 2 * B_pad * n_pairs * self.m_spa
        by += 4 * B_pad * self.ntables * self.m_spa
        p = fused_interact_top(x, ly, self.top_params, self.top_acts,
                               tile_b=tile_b,
                               cost=pl.CostEstimate(flops=int(f),
                                                    transcendentals=int(t),
                                                    bytes_accessed=int(by)))
        return p[:B]          # loss_threshold == 0.0 -> no clamp

    # ------------------------- pure-JAX reference ---------------------------

    def forward_ref(self, dense_x, lS_o, lS_i):
        def mlp(x, params, acts):
            for (w, b), act in zip(params, acts):
                y = jnp.dot(x, w, precision="highest") + b
                x = jax.nn.sigmoid(y) if act == "sigmoid" else jnp.maximum(y, 0.0)
            return x

        B = dense_x.shape[0]
        x = mlp(dense_x, self.bot_params, self.bot_acts)
        ly = []
        for k in range(self.ntables):
            L = lS_i[k].shape[0] // B
            idxk = lS_i[k].reshape(B, L)
            ly.append(jnp.take(self.emb_tables[k], idxk, axis=0).sum(axis=1))
        T = jnp.concatenate([x[:, None, :]] + [y[:, None, :] for y in ly], axis=1)
        Z = jnp.einsum("bkd,bjd->bkj", T, T, precision="highest")
        K = T.shape[1]
        li = np.array([i for i in range(K) for _ in range(i)], np.int32)
        lj = np.array([j for i in range(K) for j in range(i)], np.int32)
        R = jnp.concatenate([x, Z[:, li, lj]], axis=1)
        return mlp(R, self.top_params, self.top_acts)


# ---------------------------------- main ------------------------------------

if __name__ == "__main__":
    key = jax.random.PRNGKey(0)

    # Small synthetic DLRM config.
    B = 4                      # batch
    m_spa = 16                 # embedding dim (must match ln_bot[-1])
    ln_emb = [60, 80, 100]     # rows per embedding table
    ln_bot = [13, 32, 16]      # bottom MLP
    K = len(ln_emb) + 1
    n_pairs = K * (K - 1) // 2
    ln_top = [m_spa + n_pairs, 32, 1]   # top MLP (last layer -> sigmoid)
    L = 3                      # fixed bag (pooling) length per sample

    key, k_model = jax.random.split(key)
    model = DLRMPallas(k_model, m_spa, ln_emb, ln_bot, ln_top)

    key, k_dense = jax.random.split(key)
    dense_x = jax.random.normal(k_dense, (B, ln_bot[0]), jnp.float32)

    lS_o, lS_i = [], []
    for n in ln_emb:
        key, k_idx = jax.random.split(key)
        lS_i.append(jax.random.randint(k_idx, (B * L,), 0, n, dtype=jnp.int32))
        lS_o.append(jnp.arange(B, dtype=jnp.int32) * L)

    out = jax.block_until_ready(model.forward(dense_x, lS_o, lS_i))
    ref = jax.block_until_ready(model.forward_ref(dense_x, lS_o, lS_i))

    assert out.shape == (B, 1)
    assert np.allclose(np.asarray(out), np.asarray(ref), atol=3e-2, rtol=3e-2), (
        "Pallas output does not match reference")

    print("KERNEL_OK")
</pallas_src>

<mosaic_0001>
module attributes {stable_mosaic.version = 11 : i64} {
  func.func @_mlp_kernel(%arg0: i32, %arg1: memref<8x13xf32, #tpu.memory_space<vmem>>, %arg2: memref<13x32xf32, #tpu.memory_space<vmem>>, %arg3: memref<1x32xf32, #tpu.memory_space<vmem>>, %arg4: memref<32x16xf32, #tpu.memory_space<vmem>>, %arg5: memref<1x16xf32, #tpu.memory_space<vmem>>, %arg6: memref<8x16xf32, #tpu.memory_space<vmem>>) attributes {dimension_semantics = [#tpu.dimension_semantics<parallel>], iteration_bounds = array<i64: 1>, scalar_prefetch = 0 : i64, scratch_operands = 0 : i64, tpu.core_type = #tpu.core_type<tc>, window_params = [{transform_indices = @transform_0, window_bounds = array<i64: 8, 13>}, {pipeline_mode = #tpu.pipeline_mode<synchronous>, transform_indices = @transform_1, window_bounds = array<i64: 13, 32>}, {pipeline_mode = #tpu.pipeline_mode<synchronous>, transform_indices = @transform_2, window_bounds = array<i64: 1, 32>}, {pipeline_mode = #tpu.pipeline_mode<synchronous>, transform_indices = @transform_3, window_bounds = array<i64: 32, 16>}, {pipeline_mode = #tpu.pipeline_mode<synchronous>, transform_indices = @transform_4, window_bounds = array<i64: 1, 16>}, {transform_indices = @transform_5, window_bounds = array<i64: 8, 16>}]} {
    %c0 = arith.constant 0 : index
    %c0_0 = arith.constant 0 : index
    %0 = vector.load %arg1[%c0, %c0_0] : memref<8x13xf32, #tpu.memory_space<vmem>>, vector<8x13xf32>
    %c0_1 = arith.constant 0 : index
    %c0_2 = arith.constant 0 : index
    %1 = vector.load %arg2[%c0_1, %c0_2] : memref<13x32xf32, #tpu.memory_space<vmem>>, vector<13x32xf32>
    %c0_3 = arith.constant 0 : index
    %c0_4 = arith.constant 0 : index
    %2 = vector.load %arg3[%c0_3, %c0_4] : memref<1x32xf32, #tpu.memory_space<vmem>>, vector<1x32xf32>
    %cst = arith.constant dense<0.000000e+00> : vector<8x32xf32>
    %3 = tpu.matmul %0, %1, %cst {dimension_numbers = #tpu.dot_dimension_numbers<[1], [0], [0], [1], [0, 0, 1, 1], [], []>} : vector<8x13xf32>, vector<13x32xf32>, vector<8x32xf32> -> vector<8x32xf32>
    %4 = vector.broadcast %2 : vector<1x32xf32> to vector<8x32xf32>
    %5 = arith.addf %3, %4 : vector<8x32xf32>
    %cst_5 = arith.constant 0.000000e+00 : f32
    %6 = vector.broadcast %cst_5 : f32 to vector<8x32xf32>
    %7 = arith.maximumf %5, %6 : vector<8x32xf32>
    %c0_6 = arith.constant 0 : index
    %c0_7 = arith.constant 0 : index
    %8 = vector.load %arg4[%c0_6, %c0_7] : memref<32x16xf32, #tpu.memory_space<vmem>>, vector<32x16xf32>
    %c0_8 = arith.constant 0 : index
    %c0_9 = arith.constant 0 : index
    %9 = vector.load %arg5[%c0_8, %c0_9] : memref<1x16xf32, #tpu.memory_space<vmem>>, vector<1x16xf32>
    %cst_10 = arith.constant dense<0.000000e+00> : vector<8x16xf32>
    %10 = tpu.matmul %7, %8, %cst_10 {dimension_numbers = #tpu.dot_dimension_numbers<[1], [0], [0], [1], [0, 0, 1, 1], [], []>} : vector<8x32xf32>, vector<32x16xf32>, vector<8x16xf32> -> vector<8x16xf32>
    %11 = vector.broadcast %9 : vector<1x16xf32> to vector<8x16xf32>
    %12 = arith.addf %10, %11 : vector<8x16xf32>
    %cst_11 = arith.constant 0.000000e+00 : f32
    %13 = vector.broadcast %cst_11 : f32 to vector<8x16xf32>
    %14 = arith.maximumf %12, %13 : vector<8x16xf32>
    %c0_12 = arith.constant 0 : index
    %c0_13 = arith.constant 0 : index
    %15 = vector.load %arg6[%c0_12, %c0_13] : memref<8x16xf32, #tpu.memory_space<vmem>>, vector<8x16xf32>
    tpu.vector_store %arg6[%c0_12, %c0_13], %14 {strides = array<i32>} : memref<8x16xf32, #tpu.memory_space<vmem>>, vector<8x16xf32>,
    return
  }
  func.func @transform_0(%arg0: i32) -> (i32, i32) {
    %c0_i32 = arith.constant 0 : i32
    %c0_i32_0 = arith.constant 0 : i32
    return %arg0, %c0_i32 : i32, i32
  }
  func.func @transform_1(%arg0: i32) -> (i32, i32) {
    %c0_i32 = arith.constant 0 : i32
    %c0_i32_0 = arith.constant 0 : i32
    %c0_i32_1 = arith.constant 0 : i32
    return %c0_i32, %c0_i32_0 : i32, i32
  }
  func.func @transform_2(%arg0: i32) -> (i32, i32) {
    %c0_i32 = arith.constant 0 : i32
    %c0_i32_0 = arith.constant 0 : i32
    %c0_i32_1 = arith.constant 0 : i32
    return %c0_i32, %c0_i32_0 : i32, i32
  }
  func.func @transform_3(%arg0: i32) -> (i32, i32) {
    %c0_i32 = arith.constant 0 : i32
    %c0_i32_0 = arith.constant 0 : i32
    %c0_i32_1 = arith.constant 0 : i32
    return %c0_i32, %c0_i32_0 : i32, i32
  }
  func.func @transform_4(%arg0: i32) -> (i32, i32) {
    %c0_i32 = arith.constant 0 : i32
    %c0_i32_0 = arith.constant 0 : i32
    %c0_i32_1 = arith.constant 0 : i32
    return %c0_i32, %c0_i32_0 : i32, i32
  }
  func.func @transform_5(%arg0: i32) -> (i32, i32) {
    %c0_i32 = arith.constant 0 : i32
    %c0_i32_0 = arith.constant 0 : i32
    return %arg0, %c0_i32 : i32, i32
  }
}

</mosaic_0001>

<bundles_post_ra>
// kernel: tpu_custom_call.1
= control target key start
LH: loop header
LB: loop body
LE: loop exit
PB: predicated region body
PF: predicated region fallthrough
CT: control target
= control target key end

     0   :  { %vm35_vm0 = vcmask 1044480   ;;  %v282_v2 = vmov 0.0|0.0   ;;  %vm283_vm1 = vmmov 1   ;;  %vm284_vm3 = vmmov 0   ;;  %s356_s0 = inlined_call_operand.vmem [shape: f32[8,13], index: 0, kind: input, shape index: {}]   ;;  %s357_s1 = inlined_call_operand.vmem [shape: f32[13,32], index: 1, kind: input, shape index: {}]   ;;  %s358_s2 = inlined_call_operand.vmem [shape: f32[1,32], index: 2, kind: input, shape index: {}]   ;;  %s359_s3 = inlined_call_operand.vmem [shape: f32[32,16], index: 3, kind: input, shape index: {}]   ;;  %s360_s4 = inlined_call_operand.vmem [shape: f32[1,16], index: 4, kind: input, shape index: {}]   ;;  %s361_s5 = inlined_call_operand.hbm [shape: f32[8,16], index: 5, kind: output, shape index: {}]  }
   0x1   :  { %v22_v0 = vld [vmem:[%s357_s1] sm:$0xff]  ;;  %v23_v1 = vld [vmem:[%s357_s1 + $0x8] sm:$0x1f]  ;;  %243 = vmatprep.subr.bf16.mxu0 %v282_v2  ;;  %vm245_vm2 = vmpackc.low %vm35_vm0, %vm283_vm1  ;;  %247 = vmatprep.subr.bf16.mxu1 %v282_v2  ;;  %v285_v5 = vmov 0.0  }
   0x2   :  { %v244_v3 = vpack.c.bf16 %v23_v1, %v22_v0  ;;  %v110_v4 = vld [vmem:[%s359_s3] sm:$0xff]  ;;  %229 = vmatprep.mubr.msk.f32.mxu0 %vm284_vm3, %v285_v5  ;;  %v111_v6 = vld [vmem:[%s359_s3 + $0x8] sm:$0xff]  ;;  %240 = vmatprep.mubr.msk.f32.mxu1 %vm284_vm3, %v285_v5 }
   0x3   :  { %10 = vsyncpa [#allocation3], 0  ;;  %v21_v7 = vld [vmem:[%s356_s0] sm:$0xff]  ;;  %vm31_vm4 = vcmask 105472   ;;  %v248_v8 = vpack.c.bf16 %v111_v6, %v110_v4  ;;  %v112_v9 = vld [vmem:[%s359_s3 + $0x10] sm:$0xff]  ;;  %vm121_vm5 = vcmask 261120  }
   0x4   :  { %246 = vmatpush3.bf16.msk.msra.mxu0 %vm245_vm2, %v244_v3  ;;  %v113_v10 = vld [vmem:[%s359_s3 + $0x18] sm:$0xff]  ;;  %v212_v12 = vld [vmem:[%s358_s2] ss:$0 sm:$0xff]  ;;  %s286_s9 = smov [#allocation2]   ;;  %vm196_vm6 = vcmask 130048  }
   0x5   :  { %249 = vmatpush3.bf16.msra.mxu1 %v248_v8  ;;  %v251_v11 = vpack.c.bf16 %v113_v10, %v112_v9  ;;  %v215_v17 = vld [vmem:[%s360_s4] ss:$0 sm:$0xff]  ;;  %s204_s10 = sshll.u32 %s286_s9, 4  ;;  %s205_s10 = int_to_ptr.vmem [resolvable:$true] %s204_s10 }
   0x6   :  { %250 = vmatprep.subr.bf16.mxu1 %v282_v2  ;;  %s258_s2 = scalar_lea.vmem %s205_s10, 128  ;;  %p263_p1 = scmp.lt.s32.totalorder %s205_s10, %s205_s10 }
   0x7   :  { %230 = vmatmul.mubr.msk.f32.vlgmr.msra.gmra.mrb[0].mxu0 %vm31_vm4, %v21_v7  ;;  %p259_p0 = scmp.ne.s32.totalorder %s205_s10, %s258_s2  ;;  %p264_p2 = scmp.lt.s32.totalorder %s258_s2, %s258_s2 }
   0x9   :  { %252 = vmatpush3.bf16.msra.mxu1 %v251_v11  ;;  %p265_p3 = por %p264_p2, %p263_p1 }
   0xb   :  { %p266_p4 = pnand %p265_p3, %p259_p0 }
  0xda   :  { %v105_v13 = vpop.f32.mrb[0].mxu0 }
  0xdb   :  { %v106_v14 = vadd.f32 %v212_v12, %v105_v13  ;;  %v231_v15 = vpop.f32.mrb[1].mxu0 }
  0xdd   :  { %v109_v16 = vmax.f32 %v106_v14, 0.0 }
  0xdf   :  { %241 = vmatmul.mubr.msk.f32.vlgmr.msra.gmra.mrb[0].mxu1 %vm121_vm5, %v109_v16 }
 0x1b2   :  { %v191_v18 = vpop.f32.mrb[0].mxu1 }
 0x1b3   :  { %v192_v19 = vadd.f32 %v215_v17, %v191_v18  ;;  %v242_v20 = vpop.f32.mrb[1].mxu1 }
 0x1b5   :  { %v195_v21 = vmax.f32 %v192_v19, 0.0 }
 0x1b7   :  { %197 = vst.msk [vmem:[#allocation2] sm:$0xff] %vm196_vm6, %v195_v21 }
 0x1b8   :  { %269 = shalt.err (!%p266_p4)
}
 0x1b9   :  { %s270_s4 = scalar_lea.hbm %s361_s5, 128 }
 0x1ba   :  { %p271_p5 = scmp.ne.s32.totalorder %s361_s5, %s270_s4  ;;  %p274_p6 = scmp.lt.u32.totalorder %s270_s4, %s361_s5 }
 0x1bc   :  { %p276_p7 = pnand %p274_p6, %p271_p5 }
 0x1be   :  { %279 = shalt.err (!%p276_p7)
}
 0x1bf   :  { %207 = dma.vmem_to_hbm [thread:$0]  %s205_s10, 128, %s361_s5, [#allocation3]  }
 0x1c0   :  { %280 = dma.done.wait [#allocation3], 128  }
 0x1c1   :  { %281 = vsyncadd [#allocation3], 4294967168 }
 0x1c2   :  { %211 = vsyncpa [#allocation3], 1 }

</bundles_post_ra>
